<compile_context>
chip_gen: v7x
topology: tpu7x:2x2x1
jax: 0.10.0
libtpu: 0.0.40
codegen_flags: <defaults>
</compile_context>

<pallas_src>
import jax
import jax.numpy as jnp
from jax.experimental import pallas as pl
from jax.experimental.pallas import tpu as pltpu

HIDDEN = 1024   # fixed by the module: nn.Linear(txt_code_len, 1024)
LANES = 128


def _round_up(v, m):
    return ((v + m - 1) // m) * m


def txt2img_kernel(alpha_ref, x_ref, w1_ref, b1_ref, w2_ref, b2_ref,
                   feat_ref, hc_ref):
    # alpha is a runtime SMEM scalar (no retrace needed when set_alpha() changes it)
    alpha = alpha_ref[0, 0]

    # fc1 -> ReLU   (bf16 MXU inputs, f32 accumulation; elementwise stays f32)
    xb = x_ref[...].astype(w1_ref.dtype)
    feat = jnp.dot(xb, w1_ref[...], preferred_element_type=jnp.float32)
    feat = jnp.maximum(feat + b1_ref[...], 0.0)         # b1 is (1, H), broadcasts over B
    feat_q = feat.astype(feat_ref.dtype)                # bf16: exactly what fc2 consumes
    feat_ref[...] = feat_q

    # fc2 (output dim pre-padded to a multiple of 128 lanes in the wrapper)
    hid = jnp.dot(feat_q.astype(w2_ref.dtype), w2_ref[...],
                  preferred_element_type=jnp.float32)
    hid = hid + b2_ref[...]

    # code = tanh(alpha * hid)   (EUP tanh, f32)
    code = jnp.tanh(alpha * hid)

    # Single lane-dense output slab [hid | code]; each half is a multiple of 128
    # lanes, so both stores are unmasked full-width vst into one writeback stream.
    np_ = hid.shape[-1]
    hc_ref[:, :np_] = hid.astype(hc_ref.dtype)
    hc_ref[:, np_:] = code.astype(hc_ref.dtype)


def txt2img_forward(x, w1, b1, w2, b2, *, alpha=1.0, bm=None):
    B, F = x.shape
    H = w1.shape[1]
    C = w2.shape[1]
    assert w1.shape == (F, H) and b1.shape == (1, H)
    assert w2.shape == (H, C) and b2.shape == (1, C)

    # Pad fc2's output dim to a full lane group: unmasked stores + full-width MXU
    # result pop.  Extra FLOPs/bytes are negligible at these sizes.
    Np = max(LANES, _round_up(C, LANES))
    if Np != C:
        w2p = jnp.zeros((H, Np), w2.dtype).at[:, :C].set(w2)
        b2p = jnp.zeros((1, Np), b2.dtype).at[:, :C].set(b2)
    else:
        w2p, b2p = w2, b2

    # Batch tiling: single tile at small B; >=2 "parallel" tiles once B >= 16 so
    # v7x's two TensorCores split the batch.  (No-op at the B=8 test shape.)
    if bm is None:
        bm = B if B < 16 else min(256, _round_up(pl.cdiv(B, 2), 8))
    grid = (pl.cdiv(B, bm),)

    alpha_arr = jnp.asarray(alpha, jnp.float32).reshape(1, 1)

    # Explicit VMEM budget: single-buffered resident weights + double-buffered
    # pipelined tiles, with headroom; never below the 32 MiB scoped default.
    nbytes = lambda a: a.size * a.dtype.itemsize
    resident = nbytes(w1) + nbytes(b1) + nbytes(w2p) + nbytes(b2p)
    per_tile = (bm * F * x.dtype.itemsize       # x tile
                + bm * H * 2                    # feat tile (bf16)
                + bm * 2 * Np * 4)              # [hid | code] tile (f32)
    vmem_limit = int(min(120 << 20,
                         max(32 << 20, 2 * (resident + 2 * per_tile) + (4 << 20))))

    cost = pl.CostEstimate(
        flops=2 * B * F * H + 2 * B * H * Np,
        transcendentals=B * Np,                  # tanh
        bytes_accessed=int(nbytes(x) + resident + B * H * 2 + B * 2 * Np * 4),
    )

    feat, hc = pl.pallas_call(
        txt2img_kernel,
        out_shape=(
            jax.ShapeDtypeStruct((B, H), jnp.bfloat16),       # feat (bf16: what fc2 used)
            jax.ShapeDtypeStruct((B, 2 * Np), jnp.float32),   # packed [hid | code]
        ),
        grid_spec=pltpu.PrefetchScalarGridSpec(
            num_scalar_prefetch=0,
            grid=grid,
            in_specs=[
                pl.BlockSpec(memory_space=pltpu.MemorySpace.SMEM),  # alpha (1,1) scalar
                pl.BlockSpec((bm, F), lambda i: (i, 0)),            # x batch tile
                pl.BlockSpec(memory_space=pltpu.MemorySpace.VMEM),  # W1 resident, 1 buffer
                pl.BlockSpec(memory_space=pltpu.MemorySpace.VMEM),  # b1
                pl.BlockSpec(memory_space=pltpu.MemorySpace.VMEM),  # W2 resident, 1 buffer
                pl.BlockSpec(memory_space=pltpu.MemorySpace.VMEM),  # b2
            ],
            out_specs=[
                pl.BlockSpec((bm, H), lambda i: (i, 0)),            # feat
                pl.BlockSpec((bm, 2 * Np), lambda i: (i, 0)),       # [hid | code] slab
            ],
        ),
        compiler_params=pltpu.CompilerParams(
            dimension_semantics=("parallel",),   # batch tiles are independent
            vmem_limit_bytes=vmem_limit,
        ),
        cost_estimate=cost,
    )(alpha_arr, x, w1, b1, w2p, b2p)

    hid = hc[:, :C]
    code = hc[:, Np:Np + C]
    return feat, hid, code


def init_txt2img_params(key, txt_code_len, img_code_len, hidden=HIDDEN,
                        weight_dtype=jnp.bfloat16):
    """PyTorch-default Linear init (U(-1/sqrt(fan_in), 1/sqrt(fan_in))), transposed layout."""
    k1, k2, k3, k4 = jax.random.split(key, 4)
    bound1 = 1.0 / (txt_code_len ** 0.5)
    w1 = jax.random.uniform(k1, (txt_code_len, hidden), jnp.float32,
                            -bound1, bound1).astype(weight_dtype)
    b1 = jax.random.uniform(k2, (1, hidden), jnp.float32, -bound1, bound1)
    bound2 = 1.0 / (hidden ** 0.5)
    w2 = jax.random.uniform(k3, (hidden, img_code_len), jnp.float32,
                            -bound2, bound2).astype(weight_dtype)
    b2 = jax.random.uniform(k4, (1, img_code_len), jnp.float32, -bound2, bound2)
    return w1, b1, w2, b2


def txt2img_ref(x, w1, b1, w2, b2, alpha=1.0):
    """Pure-JAX reference mirroring the kernel's exact numerics (bf16 MXU, f32 accum,
    bf16 feat fed to fc2)."""
    feat32 = jnp.maximum(
        jnp.dot(x.astype(w1.dtype), w1, preferred_element_type=jnp.float32) + b1, 0.0)
    feat = feat32.astype(jnp.bfloat16)
    hid = jnp.dot(feat.astype(w2.dtype), w2, preferred_element_type=jnp.float32) + b2
    code = jnp.tanh(alpha * hid)
    return feat, hid, code


if __name__ == "__main__":
    txt_code_len = 16
    img_code_len = 16
    batch = 8

    key = jax.random.PRNGKey(0)
    kx, kp = jax.random.split(key)
    x = jax.random.normal(kx, (batch, txt_code_len), jnp.float32).astype(jnp.bfloat16)
    w1, b1, w2, b2 = init_txt2img_params(kp, txt_code_len, img_code_len,
                                         weight_dtype=jnp.bfloat16)

    feat, hid, code = txt2img_forward(x, w1, b1, w2, b2, alpha=1.0)
    jax.block_until_ready((feat, hid, code))

    feat_r, hid_r, code_r = txt2img_ref(x, w1, b1, w2, b2, alpha=1.0)

    assert feat.shape == (batch, HIDDEN) and feat.dtype == jnp.bfloat16
    assert hid.shape == (batch, img_code_len)
    assert code.shape == (batch, img_code_len)
    assert jnp.allclose(feat.astype(jnp.float32), feat_r.astype(jnp.float32),
                        atol=1e-2, rtol=1e-2), "feat mismatch vs reference"
    assert jnp.allclose(hid, hid_r, atol=1e-2, rtol=1e-2), "hid mismatch vs reference"
    assert jnp.allclose(code, code_r, atol=1e-2, rtol=1e-2), "code mismatch vs reference"

    print("KERNEL_OK")
</pallas_src>

<mosaic_0001>
module attributes {stable_mosaic.version = 11 : i64} {
  func.func @txt2img_kernel(%arg0: i32, %arg1: memref<1x1xf32, #tpu.memory_space<smem>>, %arg2: memref<8x16xbf16, #tpu.memory_space<vmem>>, %arg3: memref<16x1024xbf16, #tpu.memory_space<vmem>>, %arg4: memref<1x1024xf32, #tpu.memory_space<vmem>>, %arg5: memref<1024x128xbf16, #tpu.memory_space<vmem>>, %arg6: memref<1x128xf32, #tpu.memory_space<vmem>>, %arg7: memref<8x1024xbf16, #tpu.memory_space<vmem>>, %arg8: memref<8x256xf32, #tpu.memory_space<vmem>>) attributes {dimension_semantics = [#tpu.dimension_semantics<parallel>], iteration_bounds = array<i64: 1>, scalar_prefetch = 0 : i64, scratch_operands = 0 : i64, tpu.core_type = #tpu.core_type<tc>, window_params = [{transform_indices = @transform_0, window_bounds = array<i64: 1, 1>}, {transform_indices = @transform_1, window_bounds = array<i64: 8, 16>}, {pipeline_mode = #tpu.pipeline_mode<synchronous>, transform_indices = @transform_2, window_bounds = array<i64: 16, 1024>}, {pipeline_mode = #tpu.pipeline_mode<synchronous>, transform_indices = @transform_3, window_bounds = array<i64: 1, 1024>}, {pipeline_mode = #tpu.pipeline_mode<synchronous>, transform_indices = @transform_4, window_bounds = array<i64: 1024, 128>}, {pipeline_mode = #tpu.pipeline_mode<synchronous>, transform_indices = @transform_5, window_bounds = array<i64: 1, 128>}, {transform_indices = @transform_6, window_bounds = array<i64: 8, 1024>}, {transform_indices = @transform_7, window_bounds = array<i64: 8, 256>}]} {
    %c0 = arith.constant 0 : index
    %c0_0 = arith.constant 0 : index
    %0 = memref.load %arg1[%c0, %c0_0] : memref<1x1xf32, #tpu.memory_space<smem>>
    %c0_1 = arith.constant 0 : index
    %c0_2 = arith.constant 0 : index
    %1 = vector.load %arg2[%c0_1, %c0_2] : memref<8x16xbf16, #tpu.memory_space<vmem>>, vector<8x16xbf16>
    %c0_3 = arith.constant 0 : index
    %c0_4 = arith.constant 0 : index
    %2 = vector.load %arg3[%c0_3, %c0_4] : memref<16x1024xbf16, #tpu.memory_space<vmem>>, vector<16x1024xbf16>
    %cst = arith.constant dense<0.000000e+00> : vector<8x1024xf32>
    %3 = tpu.matmul %1, %2, %cst {dimension_numbers = #tpu.dot_dimension_numbers<[1], [0], [0], [1], [0, 0, 1, 1], [], []>} : vector<8x16xbf16>, vector<16x1024xbf16>, vector<8x1024xf32> -> vector<8x1024xf32>
    %c0_5 = arith.constant 0 : index
    %c0_6 = arith.constant 0 : index
    %4 = vector.load %arg4[%c0_5, %c0_6] : memref<1x1024xf32, #tpu.memory_space<vmem>>, vector<1x1024xf32>
    %5 = vector.broadcast %4 : vector<1x1024xf32> to vector<8x1024xf32>
    %6 = arith.addf %3, %5 : vector<8x1024xf32>
    %cst_7 = arith.constant 0.000000e+00 : f32
    %7 = vector.broadcast %cst_7 : f32 to vector<8x1024xf32>
    %8 = arith.maximumf %6, %7 : vector<8x1024xf32>
    %9 = arith.truncf %8 : vector<8x1024xf32> to vector<8x1024xbf16>
    %c0_8 = arith.constant 0 : index
    %c0_9 = arith.constant 0 : index
    %10 = vector.load %arg7[%c0_8, %c0_9] : memref<8x1024xbf16, #tpu.memory_space<vmem>>, vector<8x1024xbf16>
    tpu.vector_store %arg7[%c0_8, %c0_9], %9 {strides = array<i32>} : memref<8x1024xbf16, #tpu.memory_space<vmem>>, vector<8x1024xbf16>,
    %c0_10 = arith.constant 0 : index
    %c0_11 = arith.constant 0 : index
    %11 = vector.load %arg5[%c0_10, %c0_11] : memref<1024x128xbf16, #tpu.memory_space<vmem>>, vector<1024x128xbf16>
    %cst_12 = arith.constant dense<0.000000e+00> : vector<8x128xf32>
    %12 = tpu.matmul %9, %11, %cst_12 {dimension_numbers = #tpu.dot_dimension_numbers<[1], [0], [0], [1], [0, 0, 1, 1], [], []>} : vector<8x1024xbf16>, vector<1024x128xbf16>, vector<8x128xf32> -> vector<8x128xf32>
    %c0_13 = arith.constant 0 : index
    %c0_14 = arith.constant 0 : index
    %13 = vector.load %arg6[%c0_13, %c0_14] : memref<1x128xf32, #tpu.memory_space<vmem>>, vector<1x128xf32>
    %14 = vector.broadcast %13 : vector<1x128xf32> to vector<8x128xf32>
    %15 = arith.addf %12, %14 : vector<8x128xf32>
    %16 = vector.broadcast %0 : f32 to vector<8x128xf32>
    %17 = arith.mulf %16, %15 : vector<8x128xf32>
    %18 = math.tanh %17 : vector<8x128xf32>
    %c0_15 = arith.constant 0 : index
    %c0_16 = arith.constant 0 : index
    %19 = vector.load %arg8[%c0_15, %c0_16] : memref<8x256xf32, #tpu.memory_space<vmem>>, vector<8x128xf32>
    tpu.vector_store %arg8[%c0_15, %c0_16], %15 {strides = array<i32>} : memref<8x256xf32, #tpu.memory_space<vmem>>, vector<8x128xf32>,
    %c0_17 = arith.constant 0 : index
    %c128 = arith.constant 128 : index
    %20 = vector.load %arg8[%c0_17, %c128] : memref<8x256xf32, #tpu.memory_space<vmem>>, vector<8x128xf32>
    tpu.vector_store %arg8[%c0_17, %c128], %18 {strides = array<i32>} : memref<8x256xf32, #tpu.memory_space<vmem>>, vector<8x128xf32>,
    return
  }
  func.func @transform_0(%arg0: i32) -> (i32, i32) {
    %c0_i32 = arith.constant 0 : i32
    %c0_i32_0 = arith.constant 0 : i32
    %c0_i32_1 = arith.constant 0 : i32
    return %c0_i32, %c0_i32_0 : i32, i32
  }
  func.func @transform_1(%arg0: i32) -> (i32, i32) {
    %c0_i32 = arith.constant 0 : i32
    %c0_i32_0 = arith.constant 0 : i32
    return %arg0, %c0_i32 : i32, i32
  }
  func.func @transform_2(%arg0: i32) -> (i32, i32) {
    %c0_i32 = arith.constant 0 : i32
    %c0_i32_0 = arith.constant 0 : i32
    %c0_i32_1 = arith.constant 0 : i32
    return %c0_i32, %c0_i32_0 : i32, i32
  }
  func.func @transform_3(%arg0: i32) -> (i32, i32) {
    %c0_i32 = arith.constant 0 : i32
    %c0_i32_0 = arith.constant 0 : i32
    %c0_i32_1 = arith.constant 0 : i32
    return %c0_i32, %c0_i32_0 : i32, i32
  }
  func.func @transform_4(%arg0: i32) -> (i32, i32) {
    %c0_i32 = arith.constant 0 : i32
    %c0_i32_0 = arith.constant 0 : i32
    %c0_i32_1 = arith.constant 0 : i32
    return %c0_i32, %c0_i32_0 : i32, i32
  }
  func.func @transform_5(%arg0: i32) -> (i32, i32) {
    %c0_i32 = arith.constant 0 : i32
    %c0_i32_0 = arith.constant 0 : i32
    %c0_i32_1 = arith.constant 0 : i32
    return %c0_i32, %c0_i32_0 : i32, i32
  }
  func.func @transform_6(%arg0: i32) -> (i32, i32) {
    %c0_i32 = arith.constant 0 : i32
    %c0_i32_0 = arith.constant 0 : i32
    return %arg0, %c0_i32 : i32, i32
  }
  func.func @transform_7(%arg0: i32) -> (i32, i32) {
    %c0_i32 = arith.constant 0 : i32
    %c0_i32_0 = arith.constant 0 : i32
    return %arg0, %c0_i32 : i32, i32
  }
}

</mosaic_0001>

<bundles_post_ra>
// kernel: tpu_custom_call.1
= control target key start
LH: loop header
LB: loop body
LE: loop exit
PB: predicated region body
PF: predicated region fallthrough
CT: control target
= control target key end

     0   :  { %14 = vsyncpa [#allocation4], 0  ;;  %s1581_s0 = inlined_call_operand.<no memory space> [shape: f32[1,1], index: 0, kind: input, shape index: {}]   ;;  %s1582_s1 = inlined_call_operand.hbm [shape: bf16[8,16], index: 1, kind: input, shape index: {}]   ;;  %s1583_s2 = inlined_call_operand.hbm [shape: bf16[16,1024], index: 2, kind: input, shape index: {}]   ;;  %s1584_s3 = inlined_call_operand.vmem [shape: f32[1,1024], index: 3, kind: input, shape index: {}]   ;;  %s1585_s4 = inlined_call_operand.hbm [shape: bf16[1024,128], index: 4, kind: input, shape index: {}]   ;;  %s1586_s5 = inlined_call_operand.vmem [shape: f32[1,128], index: 5, kind: input, shape index: {}]   ;;  %s1587_s6 = inlined_call_operand.hbm [shape: bf16[8,1024], index: 6, kind: output, shape index: {0}]   ;;  %s1588_s7 = inlined_call_operand.hbm [shape: f32[8,256], index: 7, kind: output, shape index: {1}]  }
   0x1   :  { %15 = vsyncpa [#allocation7], 0 }
   0x2   :  { %16 = vsyncpa [#allocation5], 0 }
   0x3   :  { %17 = vsyncpa [#allocation11], 0  ;;  %s1453_s24 = smov [#allocation6]   ;;  %s1335_s28 = scalar_lea.hbm %s1583_s2, 1024 }
   0x4   :  { %s35_s25 = sshll.u32 %s1453_s24, 4  ;;  %p1336_p0 = scmp.ne.s32.totalorder %s1583_s2, %s1335_s28  ;;  %s36_s25 = int_to_ptr.vmem [resolvable:$true] %s35_s25 }
   0x5   :  { %p1339_p1 = scmp.lt.u32.totalorder %s1335_s28, %s1583_s2 }
   0x7   :  { %p1341_p2 = pnand %p1339_p1, %p1336_p0 }
   0x9   :  { %1344 = shalt.err (!%p1341_p2)
}
   0xa   :  { %s1345_s10 = scalar_lea.vmem %s36_s25, 1024  ;;  %p1350_p4 = scmp.lt.s32.totalorder %s36_s25, %s36_s25 }
   0xb   :  { %p1346_p3 = scmp.ne.s32.totalorder %s36_s25, %s1345_s10  ;;  %p1351_p5 = scmp.lt.s32.totalorder %s1345_s10, %s1345_s10 }
   0xd   :  { %p1352_p6 = por %p1351_p5, %p1350_p4 }
   0xf   :  { %p1353_p7 = pnand %p1352_p6, %p1346_p3 }
  0x11   :  { %1356 = shalt.err (!%p1353_p7)
}
  0x12   :  { %s1454_s11 = smov 512   ;;  %s1455_s12 = smov 32  }
  0x13   :  { %41 = dma.hbm_to_vmem [thread:$0]  %s1583_s2, 1024, %s36_s25, [#allocation7], %s1454_s11, %s1454_s11, %s1455_s12  }
  0x14   :  { %s1456_s15 = smov [#allocation3]   ;;  %s1457_s17 = smov [#allocation8]  }
  0x15   :  { %s26_s16 = sshll.u32 %s1456_s15, 4  ;;  %s49_s18 = sshll.u32 %s1457_s17, 4  ;;  %s27_s16 = int_to_ptr.vmem [resolvable:$true] %s26_s16  ;;  %s50_s18 = int_to_ptr.vmem [resolvable:$true] %s49_s18 }
  0x16   :  { %s1357_s21 = scalar_lea.hbm %s1582_s1, 64 }
  0x17   :  { %p1358_p8 = scmp.ne.s32.totalorder %s1582_s1, %s1357_s21  ;;  %p1361_p9 = scmp.lt.u32.totalorder %s1357_s21, %s1582_s1 }
  0x19   :  { %p1363_p10 = pnand %p1361_p9, %p1358_p8 }
  0x1b   :  { %1366 = shalt.err (!%p1363_p10)
}
  0x1c   :  { %s1367_s2 = scalar_lea.vmem %s27_s16, 64  ;;  %p1372_p12 = scmp.lt.s32.totalorder %s27_s16, %s27_s16 }
  0x1d   :  { %p1368_p11 = scmp.ne.s32.totalorder %s27_s16, %s1367_s2  ;;  %p1373_p13 = scmp.lt.s32.totalorder %s1367_s2, %s1367_s2 }
  0x1f   :  { %p1374_p0 = por %p1373_p13, %p1372_p12 }
  0x21   :  { %p1375_p1 = pnand %p1374_p0, %p1368_p11 }
  0x23   :  { %1378 = shalt.err (!%p1375_p1)
}
  0x24   :  { %29 = dma.hbm_to_vmem [thread:$0]  %s1582_s1, 64, %s27_s16, [#allocation4]  }
  0x25   :  { %s1379_s30 = scalar_lea.hbm %s1585_s4, 8192 }
  0x26   :  { %p1380_p2 = scmp.ne.s32.totalorder %s1585_s4, %s1379_s30  ;;  %p1383_p3 = scmp.lt.u32.totalorder %s1379_s30, %s1585_s4 }
  0x28   :  { %p1385_p4 = pnand %p1383_p3, %p1380_p2 }
  0x2a   :  { %1388 = shalt.err (!%p1385_p4)
}
  0x2b   :  { %s1389_s12 = scalar_lea.vmem %s50_s18, 8192  ;;  %p1394_p6 = scmp.lt.s32.totalorder %s50_s18, %s50_s18 }
  0x2c   :  { %p1390_p5 = scmp.ne.s32.totalorder %s50_s18, %s1389_s12  ;;  %p1395_p7 = scmp.lt.s32.totalorder %s1389_s12, %s1389_s12 }
  0x2e   :  { %p1396_p8 = por %p1395_p7, %p1394_p6 }
  0x30   :  { %p1397_p9 = pnand %p1396_p8, %p1390_p5 }
  0x32   :  { %1400 = shalt.err (!%p1397_p9)
}
  0x33   :  { %s1458_s1 = smov 64   ;;  %s1459_s13 = smov 4  }
  0x34   :  { %55 = dma.hbm_to_vmem [thread:$0]  %s1585_s4, 8192, %s50_s18, [#allocation7], %s1458_s1, %s1458_s1, %s1459_s13  }
  0x35   :  { %1445 = dma.done.wait [#allocation4], 64  }
  0x36   :  { %1446 = vsyncadd [#allocation4], 4294967232 }
  0x37   :  { %1447 = dma.done.wait [#allocation7], 9216  }
  0x38   :  { %1448 = vsyncadd [#allocation7], 4294958080  ;;  %v1460_v0 = vmov 0   ;;  %v70_v1 = vld [vmem:[#allocation6] sm:$0xff]  ;;  %v71_v3 = vld [vmem:[#allocation6 + $0x8] sm:$0xff]  ;;  %vm160_vm0 = vcmask 130048   ;;  %v80_v52 = vlaneseq }
  0x39   :  { %196 = vmatprep.mubr.bf16.mxu0 %v1460_v0  ;;  %237 = vmatprep.mubr.bf16.mxu1 %v1460_v0  ;;  %v74_v2 = vld [vmem:[#allocation6 + $0x20] sm:$0xff]  ;;  %v75_v5 = vld [vmem:[#allocation6 + $0x28] sm:$0xff]  ;;  %v72_v7 = vld [vmem:[#allocation6 + $0x10] sm:$0xff] }
  0x3a   :  { %v1087_v4 = vcombine.high %v70_v1, %v74_v2  ;;  %v1086_v6 = vcombine.low %v70_v1, %v74_v2  ;;  %v1089_v8 = vcombine.high %v71_v3, %v75_v5  ;;  %v1088_v9 = vcombine.low %v71_v3, %v75_v5  ;;  %v76_v10 = vld [vmem:[#allocation6 + $0x30] sm:$0xff]  ;;  %v73_v11 = vld [vmem:[#allocation6 + $0x18] sm:$0xff]  ;;  %v1269_v18 = vld [vmem:[#allocation8 + $0x40] sm:$0xff]  }
  0x3b   :  { %v77_v12 = vld [vmem:[#allocation6 + $0x38] sm:$0xff]  ;;  %v1091_v13 = vcombine.high %v72_v7, %v76_v10  ;;  %v1090_v16 = vcombine.low %v72_v7, %v76_v10  ;;  %v1270_v19 = vld [vmem:[#allocation8 + $0xc0] sm:$0xff]   ;;  %v1273_v22 = vld [vmem:[#allocation8 + $0x48] sm:$0xff]   ;;  %v81_v53 = vshrl.u32 %v80_v52, 7 }
  0x3c   :  { %164 = vmatprep.subr.bf16.mxu0 %v1087_v4  ;;  %v1093_v14 = vcombine.high %v73_v11, %v77_v12  ;;  %205 = vmatprep.subr.bf16.mxu1 %v1089_v8  ;;  %v69_v15 = vld [vmem:[#allocation3] sm:$0xf]  ;;  %v1092_v17 = vcombine.low %v73_v11, %v77_v12  ;;  %v1271_v20 = vld [vmem:[#allocation8] sm:$0xff]   ;;  %v1274_v23 = vld [vmem:[#allocation8 + $0xc8] sm:$0xff]  }
  0x3d   :  { %165 = vmatpush1.bf16.msra.mxu0 %v1086_v6  ;;  %206 = vmatpush1.bf16.msra.mxu1 %v1088_v9  ;;  %v1272_v21 = vld [vmem:[#allocation8 + $0x80] sm:$0xff]   ;;  %v1275_v24 = vld [vmem:[#allocation8 + $0x8] sm:$0xff]   ;;  %v1277_v26 = vld [vmem:[#allocation8 + $0x50] sm:$0xff]   ;;  %v82_v54 = vsub.s32 0, %v81_v53  ;;  %v90_v56 = vsub.s32 2, %v81_v53  ;;  %v86_v57 = vsub.s32 1, %v81_v53 }
  0x3e   :  { %246 = vmatprep.subr.bf16.mxu0 %v1091_v13  ;;  %287 = vmatprep.subr.bf16.mxu1 %v1093_v14  ;;  %v1276_v25 = vld [vmem:[#allocation8 + $0x88] sm:$0xff]   ;;  %v1278_v27 = vld [vmem:[#allocation8 + $0xd0] sm:$0xff]   ;;  %v1281_v30 = vld [vmem:[#allocation8 + $0x58] sm:$0xff]   ;;  %v94_v58 = vsub.s32 3, %v81_v53  ;;  %v98_v3 = vsub.s32 4, %v81_v53  ;;  %v102_v4 = vsub.s32 5, %v81_v53 }
  0x3f   :  { %v1279_v28 = vld [vmem:[#allocation8 + $0x10] sm:$0xff]   ;;  %v1282_v31 = vld [vmem:[#allocation8 + $0xd8] sm:$0xff]   ;;  %v1285_v34 = vld [vmem:[#allocation8 + $0x60] sm:$0xff]   ;;  %v106_v9 = vsub.s32 6, %v81_v53  ;;  %v110_v14 = vsub.s32 7, %v81_v53 }
  0x40   :  { %1094 = vmatmul.mubr.msk.bf16.vlgmr.msra.gmra.mrb[0].mxu0 %vm160_vm0, %v69_v15  ;;  %1095 = vmatmul.mubr.msk.bf16.vlgmr.msra.gmra.mrb[0].mxu1 %vm160_vm0, %v69_v15  ;;  %v1280_v29 = vld [vmem:[#allocation8 + $0x90] sm:$0xff]   ;;  %v1283_v32 = vld [vmem:[#allocation8 + $0x18] sm:$0xff]   ;;  %v1286_v35 = vld [vmem:[#allocation8 + $0xe0] sm:$0xff]  }
  0x41   :  { %247 = vmatpush1.bf16.msra.mxu0 %v1090_v16  ;;  %288 = vmatpush1.bf16.msra.mxu1 %v1092_v17  ;;  %v1284_v33 = vld [vmem:[#allocation8 + $0x98] sm:$0xff]   ;;  %v1287_v36 = vld [vmem:[#allocation8 + $0x20] sm:$0xff]   ;;  %v1289_v38 = vld [vmem:[#allocation8 + $0x68] sm:$0xff]  }
  0x42   :  { %278 = vmatprep.mubr.bf16.mxu0 %v1460_v0  ;;  %319 = vmatprep.mubr.bf16.mxu1 %v1460_v0  ;;  %v1288_v37 = vld [vmem:[#allocation8 + $0xa0] sm:$0xff]   ;;  %v1290_v39 = vld [vmem:[#allocation8 + $0xe8] sm:$0xff]   ;;  %v1293_v42 = vld [vmem:[#allocation8 + $0x70] sm:$0xff]  }
  0x43   :  { %1171 = vmatprep.subr.bf16.mxu0 %v1269_v18  ;;  %1193 = vmatprep.subr.bf16.mxu1 %v1270_v19  ;;  %v1291_v40 = vld [vmem:[#allocation8 + $0x28] sm:$0xff]   ;;  %v1294_v43 = vld [vmem:[#allocation8 + $0xf0] sm:$0xff]   ;;  %v1297_v46 = vld [vmem:[#allocation8 + $0x78] sm:$0xff]  }
  0x44   :  { %v1292_v41 = vld [vmem:[#allocation8 + $0xa8] sm:$0xff]   ;;  %v1295_v44 = vld [vmem:[#allocation8 + $0x30] sm:$0xff]   ;;  %v1298_v47 = vld [vmem:[#allocation8 + $0xf8] sm:$0xff]  }
  0x45   :  { %v1296_v45 = vld [vmem:[#allocation8 + $0xb0] sm:$0xff]   ;;  %v1299_v48 = vld [vmem:[#allocation8 + $0x38] sm:$0xff]   ;;  %v1301_v50 = vld [vmem:[#allocation8 + $0x140] sm:$0xff]  }
  0x46   :  { %v1300_v49 = vld [vmem:[#allocation8 + $0xb8] sm:$0xff]   ;;  %v1302_v51 = vld [vmem:[#allocation8 + $0x1c0] sm:$0xff]   ;;  %v1311_v53 = vld [vmem:[#allocation8 + $0x110] sm:$0xff]  }
  0x47   :  { %v78_v55 = vld [vmem:[%s1584_s3] sm:$0xff]  ;;  %s1461_s3 = smov [#allocation9]  }
  0x48   :  { %1096 = vmatmul.mubr.msk.bf16.vlgmr.msra.gmra.mrb[4].mxu0 %vm160_vm0, %v69_v15  ;;  %1097 = vmatmul.mubr.msk.bf16.vlgmr.msra.gmra.mrb[4].mxu1 %vm160_vm0, %v69_v15  ;;  %v83_v59 = vrot.slane %v78_v55, %v82_v54  ;;  %v91_v60 = vrot.slane %v78_v55, %v90_v56  ;;  %v87_v61 = vrot.slane %v78_v55, %v86_v57  ;;  %v1312_v56 = vld [vmem:[#allocation8 + $0x190] sm:$0xff]   ;;  %v1313_v57 = vld [vmem:[#allocation8 + $0x158] sm:$0xff]   ;;  %s1062_s17 = sshll.u32 %s1461_s3, 4  ;;  %s1063_s17 = int_to_ptr.vmem [resolvable:$true] %s1062_s17 }
  0x49   :  { %1172 = vmatpush3.bf16.msra.mxu0 %v1271_v20  ;;  %1194 = vmatpush3.bf16.msra.mxu1 %v1272_v21  ;;  %v95_v62 = vrot.slane %v78_v55, %v94_v58  ;;  %v99_v19 = vrot.slane %v78_v55, %v98_v3  ;;  %v103_v20 = vrot.slane %v78_v55, %v102_v4  ;;  %v1321_v3 = vld [vmem:[#allocation8 + $0x168] sm:$0xff]   ;;  %s1401_s18 = scalar_lea.vmem %s1063_s17, 512  ;;  %p1406_p11 = scmp.lt.s32.totalorder %s1063_s17, %s1063_s17 }
  0x4a   :  { %1173 = vmatprep.subr.bf16.mxu0 %v1273_v22  ;;  %1195 = vmatprep.subr.bf16.mxu1 %v1274_v23  ;;  %v1322_v4 = vld [vmem:[#allocation8 + $0x1e8] sm:$0xff]   ;;  %p1402_p10 = scmp.ne.s32.totalorder %s1063_s17, %s1401_s18  ;;  %p1407_p12 = scmp.lt.s32.totalorder %s1401_s18, %s1401_s18 }
  0x4c   :  { %p1408_p13 = por %p1407_p12, %p1406_p11 }
  0x4d   :  { %1174 = vmatpush3.bf16.msra.mxu0 %v1275_v24  ;;  %1196 = vmatpush3.bf16.msra.mxu1 %v1276_v25  ;;  %v1303_v24 = vld [vmem:[#allocation8 + $0x100] sm:$0xff]   ;;  %v107_v25 = vrot.slane %v78_v55, %v106_v9  ;;  %v1327_v9 = vld [vmem:[#allocation8 + $0x130] sm:$0xff]  }
  0x4e   :  { %1175 = vmatprep.subr.bf16.mxu0 %v1277_v26  ;;  %1197 = vmatprep.subr.bf16.mxu1 %v1278_v27  ;;  %p1409_p0 = pnand %p1408_p13, %p1402_p10 }
  0x51   :  { %1176 = vmatpush3.bf16.msra.mxu0 %v1279_v28  ;;  %1198 = vmatpush3.bf16.msra.mxu1 %v1280_v29  ;;  %v1304_v29 = vld [vmem:[#allocation8 + $0x180] sm:$0xff]  }
  0x52   :  { %1177 = vmatprep.subr.bf16.mxu0 %v1281_v30  ;;  %1199 = vmatprep.subr.bf16.mxu1 %v1282_v31  ;;  %v1305_v30 = vld [vmem:[#allocation8 + $0x148] sm:$0xff]   ;;  %v111_v31 = vrot.slane %v78_v55, %v110_v14  ;;  %v1332_v14 = vld [vmem:[#allocation8 + $0x1b8] sm:$0xff]  }
  0x55   :  { %1178 = vmatpush3.bf16.msra.mxu0 %v1283_v32  ;;  %1200 = vmatpush3.bf16.msra.mxu1 %v1284_v33  ;;  %v1306_v32 = vld [vmem:[#allocation8 + $0x1c8] sm:$0xff]  }
  0x56   :  { %1179 = vmatprep.subr.bf16.mxu0 %v1285_v34  ;;  %1201 = vmatprep.subr.bf16.mxu1 %v1286_v35 }
  0x59   :  { %1180 = vmatpush3.bf16.msra.mxu0 %v1287_v36  ;;  %1202 = vmatpush3.bf16.msra.mxu1 %v1288_v37  ;;  %v1307_v37 = vld [vmem:[#allocation8 + $0x108] sm:$0xff]  }
  0x5a   :  { %1181 = vmatprep.subr.bf16.mxu0 %v1289_v38  ;;  %1203 = vmatprep.subr.bf16.mxu1 %v1290_v39 }
  0x5d   :  { %1182 = vmatpush3.bf16.msra.mxu0 %v1291_v40  ;;  %1204 = vmatpush3.bf16.msra.mxu1 %v1292_v41 }
  0x5e   :  { %1183 = vmatprep.subr.bf16.mxu0 %v1293_v42  ;;  %1205 = vmatprep.subr.bf16.mxu1 %v1294_v43  ;;  %v1308_v42 = vld [vmem:[#allocation8 + $0x188] sm:$0xff]   ;;  %v1309_v43 = vld [vmem:[#allocation8 + $0x150] sm:$0xff]  }
  0x61   :  { %1184 = vmatpush3.bf16.msra.mxu0 %v1295_v44  ;;  %1206 = vmatpush3.bf16.msra.mxu1 %v1296_v45 }
  0x62   :  { %1185 = vmatprep.subr.bf16.mxu0 %v1297_v46  ;;  %1207 = vmatprep.subr.bf16.mxu1 %v1298_v47 }
  0x65   :  { %1186 = vmatpush3.bf16.msra.mxu0 %v1299_v48  ;;  %1208 = vmatpush3.bf16.msra.mxu1 %v1300_v49  ;;  %v1310_v48 = vld [vmem:[#allocation8 + $0x1d0] sm:$0xff]  }
  0x66   :  { %1215 = vmatprep.subr.bf16.mxu0 %v1301_v50  ;;  %1237 = vmatprep.subr.bf16.mxu1 %v1302_v51 }
 0x113   :  { %v198_v63 = vpop.f32.mrb[0].mxu0  ;;  %v239_v1 = vpop.f32.mrb[0].mxu1 }
 0x114   :  { %v199_v0 = vadd.f32 %v198_v63, %v83_v59  ;;  %v200_v2 = vpop.f32.mrb[1].mxu0  ;;  %v240_v5 = vadd.f32 %v239_v1, %v91_v60  ;;  %v241_v7 = vpop.f32.mrb[1].mxu1  ;;  %v1314_v60 = vld [vmem:[#allocation8 + $0x1d8] sm:$0xff]   ;;  %v1317_v63 = vld [vmem:[#allocation8 + $0x160] sm:$0xff]  }
 0x115   :  { %v201_v6 = vadd.f32 %v200_v2, %v87_v61  ;;  %v202_v8 = vpop.f32.mrb[2].mxu0  ;;  %v242_v11 = vadd.f32 %v241_v7, %v95_v62  ;;  %v243_v12 = vpop.f32.mrb[2].mxu1  ;;  %v1315_v61 = vld [vmem:[#allocation8 + $0x118] sm:$0xff]   ;;  %v1319_v1 = vld [vmem:[#allocation8 + $0x120] sm:$0xff]   ;;  %v1325_v7 = vld [vmem:[#allocation8 + $0x170] sm:$0xff]  }
 0x116   :  { %v328_v10 = vmax.f32 %v199_v0, 0.0  ;;  %v203_v13 = vpop.f32.mrb[3].mxu0  ;;  %v330_v15 = vmax.f32 %v240_v5, 0.0  ;;  %v244_v17 = vpop.f32.mrb[3].mxu1  ;;  %v1316_v62 = vld [vmem:[#allocation8 + $0x198] sm:$0xff]   ;;  %v1318_v0 = vld [vmem:[#allocation8 + $0x1e0] sm:$0xff]  }
 0x117   :  { %v329_v16 = vmax.f32 %v201_v6, 0.0  ;;  %v331_v18 = vmax.f32 %v242_v11, 0.0  ;;  %v1320_v2 = vld [vmem:[#allocation8 + $0x1a0] sm:$0xff]   ;;  %v1323_v5 = vld [vmem:[#allocation8 + $0x128] sm:$0xff]   ;;  %v1326_v8 = vld [vmem:[#allocation8 + $0x1f0] sm:$0xff]  }
 0x118   :  { %v338_v21 = vpack.c.bf16 %v330_v15, %v330_v15  ;;  %v336_v26 = vpack.c.bf16 %v328_v10, %v328_v10  ;;  %v1324_v6 = vld [vmem:[#allocation8 + $0x1a8] sm:$0xff]   ;;  %v1329_v11 = vld [vmem:[#allocation8 + $0x178] sm:$0xff]  }
 0x119   :  { %v337_v22 = vpack.c.bf16 %v329_v16, %v329_v16  ;;  %v1167_v23 = vpack.c.bf16 %v329_v16, %v328_v10  ;;  %v339_v27 = vpack.c.bf16 %v331_v18, %v331_v18  ;;  %v1168_v28 = vpack.c.bf16 %v331_v18, %v330_v15  ;;  %v1328_v10 = vld [vmem:[#allocation8 + $0x1b0] sm:$0xff]   ;;  %v1330_v12 = vld [vmem:[#allocation8 + $0x1f8] sm:$0xff]  }
 0x11a   :  { %v1331_v13 = vld [vmem:[#allocation8 + $0x138] sm:$0xff]  }
 0x11b   :  { %368 = vst [vmem:[#allocation9] sm:$0xff] %v1167_v23  ;;  %923 = vmatprep.mubr.bf16.mxu0 %v337_v22  ;;  %v280_v33 = vpop.f32.mrb[4].mxu0  ;;  %369 = vst [vmem:[#allocation9 + $0x8] sm:$0xff] %v1168_v28  ;;  %963 = vmatprep.mubr.bf16.mxu1 %v339_v27  ;;  %v321_v36 = vpop.f32.mrb[4].mxu1 }
 0x11c   :  { %924 = vmatmul.mubr.bf16.vlgmr.msra.gmra.mrb[8].mxu0 %v336_v26  ;;  %v281_v34 = vadd.f32 %v280_v33, %v99_v19  ;;  %v282_v35 = vpop.f32.mrb[5].mxu0  ;;  %964 = vmatmul.mubr.bf16.vlgmr.msra.gmra.mrb[8].mxu1 %v338_v21  ;;  %v322_v40 = vadd.f32 %v321_v36, %v107_v25  ;;  %v323_v41 = vpop.f32.mrb[5].mxu1 }
 0x11d   :  { %1216 = vmatpush3.bf16.msra.mxu0 %v1303_v24  ;;  %v283_v38 = vadd.f32 %v282_v35, %v103_v20  ;;  %v284_v39 = vpop.f32.mrb[6].mxu0  ;;  %1238 = vmatpush3.bf16.msra.mxu1 %v1304_v29  ;;  %v324_v46 = vadd.f32 %v323_v41, %v111_v31  ;;  %v325_v47 = vpop.f32.mrb[6].mxu1 }
 0x11e   :  { %1217 = vmatprep.subr.bf16.mxu0 %v1305_v30  ;;  %v1546_v44 = vmax.f32 %v281_v34, 0.0  ;;  %v285_v45 = vpop.f32.mrb[7].mxu0  ;;  %1239 = vmatprep.subr.bf16.mxu1 %v1306_v32  ;;  %v334_v50 = vmax.f32 %v322_v40, 0.0  ;;  %v326_v51 = vpop.f32.mrb[7].mxu1 }
 0x11f   :  { %v333_v49 = vmax.f32 %v283_v38, 0.0  ;;  %v335_v52 = vmax.f32 %v324_v46, 0.0 }
 0x120   :  { %v342_v15 = vpack.c.bf16 %v334_v50, %v334_v50  ;;  %v340_v16 = vpack.c.bf16 %v1546_v44, %v1546_v44 }
 0x121   :  { %1218 = vmatpush3.bf16.msra.mxu0 %v1307_v37  ;;  %v341_v54 = vpack.c.bf16 %v333_v49, %v333_v49  ;;  %v1169_v55 = vpack.c.bf16 %v333_v49, %v1546_v44  ;;  %1240 = vmatpush3.bf16.msra.mxu1 %v1308_v42  ;;  %v343_v58 = vpack.c.bf16 %v335_v52, %v335_v52 }
 0x122   :  { %1219 = vmatprep.subr.bf16.mxu0 %v1309_v43  ;;  %v1170_v59 = vpack.c.bf16 %v335_v52, %v334_v50  ;;  %1241 = vmatprep.subr.bf16.mxu1 %v1310_v48 }
 0x123   :  { %370 = vst [vmem:[#allocation9 + $0x10] sm:$0xff] %v1169_v55  ;;  %1003 = vmatprep.mubr.bf16.mxu0 %v341_v54  ;;  %1043 = vmatprep.mubr.bf16.mxu1 %v343_v58 }
 0x124   :  { %371 = vst [vmem:[#allocation9 + $0x18] sm:$0xff] %v1170_v59 }
 0x125   :  { %1220 = vmatpush3.bf16.msra.mxu0 %v1311_v53  ;;  %1242 = vmatpush3.bf16.msra.mxu1 %v1312_v56 }
 0x126   :  { %1221 = vmatprep.subr.bf16.mxu0 %v1313_v57  ;;  %1243 = vmatprep.subr.bf16.mxu1 %v1314_v60 }
 0x129   :  { %1222 = vmatpush3.bf16.msra.mxu0 %v1315_v61  ;;  %1244 = vmatpush3.bf16.msra.mxu1 %v1316_v62 }
 0x12a   :  { %1223 = vmatprep.subr.bf16.mxu0 %v1317_v63  ;;  %1245 = vmatprep.subr.bf16.mxu1 %v1318_v0 }
 0x12d   :  { %1224 = vmatpush3.bf16.msra.mxu0 %v1319_v1  ;;  %1246 = vmatpush3.bf16.msra.mxu1 %v1320_v2 }
 0x12e   :  { %1225 = vmatprep.subr.bf16.mxu0 %v1321_v3  ;;  %1247 = vmatprep.subr.bf16.mxu1 %v1322_v4 }
 0x131   :  { %1226 = vmatpush3.bf16.msra.mxu0 %v1323_v5  ;;  %1248 = vmatpush3.bf16.msra.mxu1 %v1324_v6 }
 0x132   :  { %1227 = vmatprep.subr.bf16.mxu0 %v1325_v7  ;;  %1249 = vmatprep.subr.bf16.mxu1 %v1326_v8 }
 0x135   :  { %1228 = vmatpush3.bf16.msra.mxu0 %v1327_v9  ;;  %1250 = vmatpush3.bf16.msra.mxu1 %v1328_v10 }
 0x136   :  { %1229 = vmatprep.subr.bf16.mxu0 %v1329_v11  ;;  %1251 = vmatprep.subr.bf16.mxu1 %v1330_v12 }
 0x139   :  { %1230 = vmatpush3.bf16.msra.mxu0 %v1331_v13  ;;  %1252 = vmatpush3.bf16.msra.mxu1 %v1332_v14 }
 0x13c   :  { %1004 = vmatmul.mubr.bf16.vlgmr.msra.gmra.mrb[12].mxu0 %v340_v16  ;;  %1044 = vmatmul.mubr.bf16.vlgmr.msra.gmra.mrb[12].mxu1 %v342_v15 }
 0x13d   :  { %1412 = shalt.err (!%p1409_p0)
}
 0x13e   :  { %s1413_s21 = scalar_lea.hbm %s1587_s6, 512 }
 0x13f   :  { %p1414_p1 = scmp.ne.s32.totalorder %s1587_s6, %s1413_s21  ;;  %p1417_p2 = scmp.lt.u32.totalorder %s1413_s21, %s1587_s6 }
 0x141   :  { %p1419_p3 = pnand %p1417_p2, %p1414_p1 }
 0x143   :  { %1422 = shalt.err (!%p1419_p3)
}
 0x144   :  { %1065 = dma.vmem_to_hbm [thread:$0]  %s1063_s17, 512, %s1587_s6, [#allocation5]   ;;  %v1102_v19 = vld [vmem:[%s1586_s5] ss:$0 sm:$0xff]  ;;  %v1051_v41 = vstv %s1581_s0 }
 0x145   :  { %s1462_s29 = smov [#allocation10]  }
 0x146   :  { %s1072_s30 = sshll.u32 %s1462_s29, 4  ;;  %s1073_s30 = int_to_ptr.vmem [resolvable:$true] %s1072_s30 }
 0x147   :  { %s1423_s8 = scalar_lea.vmem %s1073_s30, 256  ;;  %p1428_p5 = scmp.lt.s32.totalorder %s1073_s30, %s1073_s30 }
 0x148   :  { %p1424_p4 = scmp.ne.s32.totalorder %s1073_s30, %s1423_s8  ;;  %p1429_p6 = scmp.lt.s32.totalorder %s1423_s8, %s1423_s8 }
 0x14a   :  { %p1430_p7 = por %p1429_p6, %p1428_p5 }
 0x14c   :  { %p1431_p8 = pnand %p1430_p7, %p1424_p4 }
 0x1ef   :  { %v1187_v17 = vpop.f32.mrb[8].mxu0  ;;  %v1209_v18 = vpop.f32.mrb[8].mxu1 }
 0x1f0   :  { %v1188_v20 = vpop.f32.mrb[9].mxu0  ;;  %v1210_v22 = vpop.f32.mrb[9].mxu1 }
 0x1f1   :  { %v1189_v21 = vadd.f32 %v1188_v20, %v1187_v17  ;;  %v1190_v23 = vpop.f32.mrb[10].mxu0  ;;  %v1211_v24 = vadd.f32 %v1210_v22, %v1209_v18  ;;  %v1212_v25 = vpop.f32.mrb[10].mxu1 }
 0x1f2   :  { %v1191_v26 = vpop.f32.mrb[11].mxu0  ;;  %v1213_v28 = vpop.f32.mrb[11].mxu1 }
 0x1f3   :  { %v926_v27 = vadd.f32 %v1189_v21, %v1102_v19 }
 0x1f5   :  { %v966_v29 = vadd.f32 %v1211_v24, %v926_v27 }
 0x20f   :  { %v1231_v30 = vpop.f32.mrb[12].mxu0  ;;  %v1253_v31 = vpop.f32.mrb[12].mxu1 }
 0x210   :  { %v1232_v32 = vpop.f32.mrb[13].mxu0  ;;  %v1254_v34 = vpop.f32.mrb[13].mxu1 }
 0x211   :  { %v1233_v33 = vadd.f32 %v1232_v32, %v1231_v30  ;;  %v1234_v35 = vpop.f32.mrb[14].mxu0  ;;  %v1255_v36 = vadd.f32 %v1254_v34, %v1253_v31  ;;  %v1256_v37 = vpop.f32.mrb[14].mxu1 }
 0x212   :  { %v1235_v38 = vpop.f32.mrb[15].mxu0  ;;  %v1257_v40 = vpop.f32.mrb[15].mxu1 }
 0x213   :  { %v1006_v39 = vadd.f32 %v1233_v33, %v966_v29 }
 0x215   :  { %v1046_v42 = vadd.f32 %v1255_v36, %v1006_v39 }
 0x217   :  { %v1052_v43 = vmul.f32 %v1051_v41, %v1046_v42  ;;  %1054 = vst [vmem:[#allocation10] sm:$0xff] %v1046_v42 }
 0x219   :  { %1333 = vtanh.f32 %v1052_v43 }
 0x223   :  { %v1334_v44 = vpop.eup %1333 }
 0x224   :  { %1055 = vst [vmem:[#allocation10 + $0x8] sm:$0xff] %v1334_v44 }
 0x225   :  { %1434 = shalt.err (!%p1431_p8)
}
 0x226   :  { %s1435_s0 = scalar_lea.hbm %s1588_s7, 256 }
 0x227   :  { %p1436_p9 = scmp.ne.s32.totalorder %s1588_s7, %s1435_s0  ;;  %p1439_p10 = scmp.lt.u32.totalorder %s1435_s0, %s1588_s7 }
 0x229   :  { %p1441_p11 = pnand %p1439_p10, %p1436_p9 }
 0x22b   :  { %1444 = shalt.err (!%p1441_p11)
}
 0x22c   :  { %1075 = dma.vmem_to_hbm [thread:$0]  %s1073_s30, 256, %s1588_s7, [#allocation11]  }
 0x22d   :  { %1449 = dma.done.wait [#allocation5], 512  }
 0x22e   :  { %1450 = vsyncadd [#allocation5], 4294966784 }
 0x22f   :  { %1451 = dma.done.wait [#allocation11], 256  }
 0x230   :  { %1452 = vsyncadd [#allocation11], 4294967040 }
 0x231   :  { %1082 = vsyncpa [#allocation4], 1 }
 0x232   :  { %1083 = vsyncpa [#allocation7], 1 }
 0x233   :  { %1084 = vsyncpa [#allocation5], 1 }
 0x234   :  { %1085 = vsyncpa [#allocation11], 1 }

</bundles_post_ra>
